<compile_context>
chip_gen: v5e
topology: v5e:2x2
jax: 0.10.0
libtpu: 0.0.40
codegen_flags: <defaults>
</compile_context>

<pallas_src>
import functools

import jax
import jax.numpy as jnp
import numpy as np
from jax import lax
from jax.experimental import pallas as pl
from jax.experimental.pallas import tpu as pltpu


def _block_kernel(x_ref, w1_ref, w2_ref, bias_ref, mask_ref, out_ref, *,
                  H, W, C, L, mxu_dtype):
    """One batch-group per grid step (batch folded into the lane axis).

    x_ref    : (C, L)      f32   L = NB*H*W; channels on sublanes, positions on lanes
    w*_ref   : (3, C, 3*C) bf16  BN-scale-folded weights; one (Cout, 3*Cin) im2col
                                 slab per dy row of taps
    bias_ref : (C, 2)      f32   folded per-channel biases [b1, b2]
    mask_ref : (8, L)      f32   0/1 boundary-validity masks for the 8 non-center taps
    out_ref  : (C, L)            output, same lane-dense layout
    """
    x = x_ref[...]                                   # (C, L) f32
    masks = mask_ref[...]                            # (8, L) f32, loaded once

    # Early-bf16 taps only when C aligns with the bf16 sublane tile; otherwise keep
    # the f32 path (avoids relayout copies and bf16 VPU emulation on v5e).
    tap_dtype = mxu_dtype if C % 16 == 0 else jnp.float32

    def conv3x3(inp, w_ref):
        """3x3 same-padding conv as 3 accumulating im2col matmuls (K = 3*C each)."""
        acc = None
        mask_idx = 0
        for iy, dy in enumerate((-1, 0, 1)):
            cols = []
            for dx in (-1, 0, 1):
                d = dy * W + dx
                # roll brings inp[c, p + d] to lane p (XLU slot, ~free); out-of-image
                # and cross-image wraps are zeroed by the boundary mask (VPU).
                shifted = inp if d == 0 else pltpu.roll(inp, shift=(-d) % L, axis=1)
                if not (dy == 0 and dx == 0):
                    shifted = shifted * masks[mask_idx:mask_idx + 1, :]
                    mask_idx += 1
                cols.append(shifted.astype(tap_dtype))
            x_col = jnp.concatenate(cols, axis=0).astype(mxu_dtype)   # (3*C, L)
            part = jnp.dot(w_ref[iy], x_col, preferred_element_type=jnp.float32)
            acc = part if acc is None else acc + part
        return acc                                   # (C, L) f32

    b1 = bias_ref[:, 0:1]
    b2 = bias_ref[:, 1:2]

    y1 = jnp.maximum(conv3x3(x, w1_ref) + b1, 0.0)   # conv1 + bn1 + relu (f32 epilogue)
    y2 = conv3x3(y1, w2_ref) + b2 + x                # conv2 + bn2 + identity
    out_ref[...] = y2.astype(out_ref.dtype)


def block_forward(x_nchw, params, *, mxu_dtype=jnp.bfloat16, batch_groups=1):
    """Run the Block forward pass. x_nchw: (N, C, H, W) float32."""
    N, C, H, W = x_nchw.shape
    assert H >= 3 and W >= 3, "roll+mask trick assumes H, W >= 3"
    assert N % batch_groups == 0
    NB = N // batch_groups
    HW = H * W
    L = NB * HW
    L_total = N * HW

    # Channels-first, batch+spatial flattened onto the lane axis (layout plumbing
    # done once in the wrapper, outside the kernel).
    x_cf = jnp.transpose(x_nchw, (1, 0, 2, 3)).reshape(C, L_total)

    eps = 1e-5
    # Fold conv bias + inference-mode BN into per-channel scale/bias; the scale goes
    # into the bf16 weights (one fewer (C,L) VPU multiply per conv), bias stays f32.
    s1 = params["gamma1"] / jnp.sqrt(params["var1"] + eps)
    b1 = s1 * (params["cb1"] - params["mean1"]) + params["beta1"]
    s2 = params["gamma2"] / jnp.sqrt(params["var2"] + eps)
    b2 = s2 * (params["cb2"] - params["mean2"]) + params["beta2"]
    bias = jnp.stack([b1, b2], axis=1).astype(jnp.float32)            # (C, 2)

    def prep_w(w, s):
        # (Cout, Cin, 3, 3) -> (ky, Cout, kx*Cin), BN scale folded in, bf16 for MXU.
        w_t = jnp.transpose(w, (2, 0, 3, 1)) * s[None, :, None, None]  # (ky,Cout,kx,Cin)
        return w_t.reshape(3, C, 3 * C).astype(mxu_dtype)

    w1 = prep_w(params["w1"], s1)
    w2 = prep_w(params["w2"], s2)

    # Boundary-validity masks for the 8 non-center taps, precomputed once at (8, L)
    # (pattern repeats per image; broadcast across channels in-kernel).
    yy = jnp.arange(HW, dtype=jnp.int32) // W
    xx = jnp.arange(HW, dtype=jnp.int32) % W
    rows = []
    for dy in (-1, 0, 1):
        for dx in (-1, 0, 1):
            if dy == 0 and dx == 0:
                continue
            valid = ((yy + dy >= 0) & (yy + dy <= H - 1)
                     & (xx + dx >= 0) & (xx + dx <= W - 1))
            rows.append(valid.astype(jnp.float32))
    masks = jnp.tile(jnp.stack(rows, axis=0), (1, NB))                # (8, L)

    kernel = functools.partial(_block_kernel, H=H, W=W, C=C, L=L, mxu_dtype=mxu_dtype)

    out_cf = pl.pallas_call(
        kernel,
        out_shape=jax.ShapeDtypeStruct((C, L_total), x_nchw.dtype),
        grid_spec=pltpu.PrefetchScalarGridSpec(
            num_scalar_prefetch=0,
            grid=(batch_groups,),
            in_specs=[
                pl.BlockSpec((C, L), lambda g: (0, g)),             # x (lane-dense)
                pl.BlockSpec((3, C, 3 * C), lambda g: (0, 0, 0)),   # w1 (grid-invariant)
                pl.BlockSpec((3, C, 3 * C), lambda g: (0, 0, 0)),   # w2 (grid-invariant)
                pl.BlockSpec((C, 2), lambda g: (0, 0)),             # folded biases
                pl.BlockSpec((8, L), lambda g: (0, 0)),             # tap masks
            ],
            out_specs=pl.BlockSpec((C, L), lambda g: (0, g)),
        ),
        compiler_params=pltpu.CompilerParams(
            dimension_semantics=("parallel",)),
    )(x_cf, w1, w2, bias, masks)

    # Lane-dense slab -> NCHW (wrapper-side layout plumbing).
    return jnp.transpose(out_cf.reshape(C, N, H, W), (1, 0, 2, 3))


def reference_forward(x_nchw, params):
    """Pure-JAX reference (lax.conv, full f32) for correctness checking."""
    eps = 1e-5
    dn = lax.conv_dimension_numbers(x_nchw.shape, params["w1"].shape,
                                    ("NCHW", "OIHW", "NCHW"))

    def conv(x, w, b):
        y = lax.conv_general_dilated(x, w, (1, 1), ((1, 1), (1, 1)),
                                     dimension_numbers=dn)
        return y + b.reshape(1, -1, 1, 1)

    def bn(x, g, bta, m, v):
        return (x - m.reshape(1, -1, 1, 1)) / jnp.sqrt(v.reshape(1, -1, 1, 1) + eps) \
               * g.reshape(1, -1, 1, 1) + bta.reshape(1, -1, 1, 1)

    identity = x_nchw
    y = conv(x_nchw, params["w1"], params["cb1"])
    y = bn(y, params["gamma1"], params["beta1"], params["mean1"], params["var1"])
    y = jnp.maximum(y, 0.0)
    y = conv(y, params["w2"], params["cb2"])
    y = bn(y, params["gamma2"], params["beta2"], params["mean2"], params["var2"])
    return y + identity


def init_params(key, C):
    ks = jax.random.split(key, 8)
    fan_in = C * 9
    scale = 1.0 / np.sqrt(fan_in)
    return {
        "w1": jax.random.uniform(ks[0], (C, C, 3, 3), jnp.float32, -scale, scale),
        "cb1": jax.random.uniform(ks[1], (C,), jnp.float32, -scale, scale),
        "gamma1": 1.0 + 0.1 * jax.random.normal(ks[2], (C,), jnp.float32),
        "beta1": 0.1 * jax.random.normal(ks[3], (C,), jnp.float32),
        "mean1": 0.05 * jax.random.normal(ks[4], (C,), jnp.float32),
        "var1": 1.0 + 0.1 * jnp.abs(jax.random.normal(ks[5], (C,), jnp.float32)),
        "w2": jax.random.uniform(ks[6], (C, C, 3, 3), jnp.float32, -scale, scale),
        "cb2": jax.random.uniform(ks[7], (C,), jnp.float32, -scale, scale),
        "gamma2": 1.0 + 0.05 * jnp.ones((C,), jnp.float32),
        "beta2": 0.02 * jnp.ones((C,), jnp.float32),
        "mean2": -0.03 * jnp.ones((C,), jnp.float32),
        "var2": 0.9 * jnp.ones((C,), jnp.float32),
    }


if __name__ == "__main__":
    key = jax.random.PRNGKey(0)
    kx, kp = jax.random.split(key)

    N, C, H, W = 2, 4, 16, 16  # identity_downsample=None, stride=1 -> Cin == Cout
    x = jax.random.normal(kx, (N, C, H, W), jnp.float32)
    params = init_params(kp, C)

    out = block_forward(x, params)
    out = jax.block_until_ready(out)

    ref = jax.block_until_ready(reference_forward(x, params))
    # MXU operands are bf16 (BN scale folded into weights), f32 accumulation.
    np.testing.assert_allclose(np.asarray(out), np.asarray(ref), atol=3e-2, rtol=3e-2)

    print("KERNEL_OK")
</pallas_src>

<mosaic_0001>
module attributes {stable_mosaic.version = 11 : i64} {
  func.func @_block_kernel(%arg0: i32, %arg1: memref<4x512xf32, #tpu.memory_space<vmem>>, %arg2: memref<3x4x12xbf16, #tpu.memory_space<vmem>>, %arg3: memref<3x4x12xbf16, #tpu.memory_space<vmem>>, %arg4: memref<4x2xf32, #tpu.memory_space<vmem>>, %arg5: memref<8x512xf32, #tpu.memory_space<vmem>>, %arg6: memref<4x512xf32, #tpu.memory_space<vmem>>) attributes {dimension_semantics = [#tpu.dimension_semantics<parallel>], iteration_bounds = array<i64: 1>, scalar_prefetch = 0 : i64, scratch_operands = 0 : i64, tpu.core_type = #tpu.core_type<tc>, window_params = [{transform_indices = @transform_0, window_bounds = array<i64: 4, 512>}, {pipeline_mode = #tpu.pipeline_mode<synchronous>, transform_indices = @transform_1, window_bounds = array<i64: 3, 4, 12>}, {pipeline_mode = #tpu.pipeline_mode<synchronous>, transform_indices = @transform_2, window_bounds = array<i64: 3, 4, 12>}, {pipeline_mode = #tpu.pipeline_mode<synchronous>, transform_indices = @transform_3, window_bounds = array<i64: 4, 2>}, {pipeline_mode = #tpu.pipeline_mode<synchronous>, transform_indices = @transform_4, window_bounds = array<i64: 8, 512>}, {transform_indices = @transform_5, window_bounds = array<i64: 4, 512>}]} {
    %c0 = arith.constant 0 : index
    %c0_0 = arith.constant 0 : index
    %0 = vector.load %arg1[%c0, %c0_0] : memref<4x512xf32, #tpu.memory_space<vmem>>, vector<4x512xf32>
    %c0_1 = arith.constant 0 : index
    %c0_2 = arith.constant 0 : index
    %1 = vector.load %arg5[%c0_1, %c0_2] : memref<8x512xf32, #tpu.memory_space<vmem>>, vector<8x512xf32>
    %c0_3 = arith.constant 0 : index
    %c0_4 = arith.constant 0 : index
    %2 = vector.load %arg4[%c0_3, %c0_4] : memref<4x2xf32, #tpu.memory_space<vmem>>, vector<4x1xf32>
    %c0_5 = arith.constant 0 : index
    %c1 = arith.constant 1 : index
    %3 = vector.load %arg4[%c0_5, %c1] : memref<4x2xf32, #tpu.memory_space<vmem>>, vector<4x1xf32>
    %c17_i32 = arith.constant 17 : i32
    %4 = tpu.dynamic_rotate %0 by %c17_i32 dim 1 : vector<4x512xf32>, i32 -> vector<4x512xf32>
    %5 = vector.extract_strided_slice %1 {offsets = [0, 0], sizes = [1, 512], strides = [1, 1]} : vector<8x512xf32> to vector<1x512xf32>
    %6 = vector.broadcast %5 : vector<1x512xf32> to vector<4x512xf32>
    %7 = arith.mulf %4, %6 : vector<4x512xf32>
    %c16_i32 = arith.constant 16 : i32
    %8 = tpu.dynamic_rotate %0 by %c16_i32 dim 1 : vector<4x512xf32>, i32 -> vector<4x512xf32>
    %9 = vector.extract_strided_slice %1 {offsets = [1, 0], sizes = [1, 512], strides = [1, 1]} : vector<8x512xf32> to vector<1x512xf32>
    %10 = vector.broadcast %9 : vector<1x512xf32> to vector<4x512xf32>
    %11 = arith.mulf %8, %10 : vector<4x512xf32>
    %c15_i32 = arith.constant 15 : i32
    %12 = tpu.dynamic_rotate %0 by %c15_i32 dim 1 : vector<4x512xf32>, i32 -> vector<4x512xf32>
    %13 = vector.extract_strided_slice %1 {offsets = [2, 0], sizes = [1, 512], strides = [1, 1]} : vector<8x512xf32> to vector<1x512xf32>
    %14 = vector.broadcast %13 : vector<1x512xf32> to vector<4x512xf32>
    %15 = arith.mulf %12, %14 : vector<4x512xf32>
    %16 = tpu.concatenate %7, %11, %15 in 0 : vector<4x512xf32>, vector<4x512xf32>, vector<4x512xf32> -> vector<12x512xf32>
    %17 = arith.truncf %16 : vector<12x512xf32> to vector<12x512xbf16>
    %c0_6 = arith.constant 0 : index
    %c0_7 = arith.constant 0 : index
    %c0_8 = arith.constant 0 : index
    %18 = vector.load %arg2[%c0_6, %c0_7, %c0_8] : memref<3x4x12xbf16, #tpu.memory_space<vmem>>, vector<1x4x12xbf16>
    %19 = vector.shape_cast %18 : vector<1x4x12xbf16> to vector<4x12xbf16>
    %cst = arith.constant dense<0.000000e+00> : vector<4x512xf32>
    %20 = tpu.matmul %19, %17, %cst {dimension_numbers = #tpu.dot_dimension_numbers<[1], [0], [0], [1], [0, 0, 1, 1], [], []>} : vector<4x12xbf16>, vector<12x512xbf16>, vector<4x512xf32> -> vector<4x512xf32>
    %c1_i32 = arith.constant 1 : i32
    %21 = tpu.dynamic_rotate %0 by %c1_i32 dim 1 : vector<4x512xf32>, i32 -> vector<4x512xf32>
    %22 = vector.extract_strided_slice %1 {offsets = [3, 0], sizes = [1, 512], strides = [1, 1]} : vector<8x512xf32> to vector<1x512xf32>
    %23 = vector.broadcast %22 : vector<1x512xf32> to vector<4x512xf32>
    %24 = arith.mulf %21, %23 : vector<4x512xf32>
    %c511_i32 = arith.constant 511 : i32
    %25 = tpu.dynamic_rotate %0 by %c511_i32 dim 1 : vector<4x512xf32>, i32 -> vector<4x512xf32>
    %26 = vector.extract_strided_slice %1 {offsets = [4, 0], sizes = [1, 512], strides = [1, 1]} : vector<8x512xf32> to vector<1x512xf32>
    %27 = vector.broadcast %26 : vector<1x512xf32> to vector<4x512xf32>
    %28 = arith.mulf %25, %27 : vector<4x512xf32>
    %29 = tpu.concatenate %24, %0, %28 in 0 : vector<4x512xf32>, vector<4x512xf32>, vector<4x512xf32> -> vector<12x512xf32>
    %30 = arith.truncf %29 : vector<12x512xf32> to vector<12x512xbf16>
    %c1_9 = arith.constant 1 : index
    %c0_10 = arith.constant 0 : index
    %c0_11 = arith.constant 0 : index
    %31 = vector.load %arg2[%c1_9, %c0_10, %c0_11] : memref<3x4x12xbf16, #tpu.memory_space<vmem>>, vector<1x4x12xbf16>
    %32 = vector.shape_cast %31 : vector<1x4x12xbf16> to vector<4x12xbf16>
    %cst_12 = arith.constant dense<0.000000e+00> : vector<4x512xf32>
    %33 = tpu.matmul %32, %30, %cst_12 {dimension_numbers = #tpu.dot_dimension_numbers<[1], [0], [0], [1], [0, 0, 1, 1], [], []>} : vector<4x12xbf16>, vector<12x512xbf16>, vector<4x512xf32> -> vector<4x512xf32>
    %34 = arith.addf %20, %33 : vector<4x512xf32>
    %c497_i32 = arith.constant 497 : i32
    %35 = tpu.dynamic_rotate %0 by %c497_i32 dim 1 : vector<4x512xf32>, i32 -> vector<4x512xf32>
    %36 = vector.extract_strided_slice %1 {offsets = [5, 0], sizes = [1, 512], strides = [1, 1]} : vector<8x512xf32> to vector<1x512xf32>
    %37 = vector.broadcast %36 : vector<1x512xf32> to vector<4x512xf32>
    %38 = arith.mulf %35, %37 : vector<4x512xf32>
    %c496_i32 = arith.constant 496 : i32
    %39 = tpu.dynamic_rotate %0 by %c496_i32 dim 1 : vector<4x512xf32>, i32 -> vector<4x512xf32>
    %40 = vector.extract_strided_slice %1 {offsets = [6, 0], sizes = [1, 512], strides = [1, 1]} : vector<8x512xf32> to vector<1x512xf32>
    %41 = vector.broadcast %40 : vector<1x512xf32> to vector<4x512xf32>
    %42 = arith.mulf %39, %41 : vector<4x512xf32>
    %c495_i32 = arith.constant 495 : i32
    %43 = tpu.dynamic_rotate %0 by %c495_i32 dim 1 : vector<4x512xf32>, i32 -> vector<4x512xf32>
    %44 = vector.extract_strided_slice %1 {offsets = [7, 0], sizes = [1, 512], strides = [1, 1]} : vector<8x512xf32> to vector<1x512xf32>
    %45 = vector.broadcast %44 : vector<1x512xf32> to vector<4x512xf32>
    %46 = arith.mulf %43, %45 : vector<4x512xf32>
    %47 = tpu.concatenate %38, %42, %46 in 0 : vector<4x512xf32>, vector<4x512xf32>, vector<4x512xf32> -> vector<12x512xf32>
    %48 = arith.truncf %47 : vector<12x512xf32> to vector<12x512xbf16>
    %c2 = arith.constant 2 : index
    %c0_13 = arith.constant 0 : index
    %c0_14 = arith.constant 0 : index
    %49 = vector.load %arg2[%c2, %c0_13, %c0_14] : memref<3x4x12xbf16, #tpu.memory_space<vmem>>, vector<1x4x12xbf16>
    %50 = vector.shape_cast %49 : vector<1x4x12xbf16> to vector<4x12xbf16>
    %cst_15 = arith.constant dense<0.000000e+00> : vector<4x512xf32>
    %51 = tpu.matmul %50, %48, %cst_15 {dimension_numbers = #tpu.dot_dimension_numbers<[1], [0], [0], [1], [0, 0, 1, 1], [], []>} : vector<4x12xbf16>, vector<12x512xbf16>, vector<4x512xf32> -> vector<4x512xf32>
    %52 = arith.addf %34, %51 : vector<4x512xf32>
    %53 = vector.broadcast %2 : vector<4x1xf32> to vector<4x512xf32>
    %54 = arith.addf %52, %53 : vector<4x512xf32>
    %cst_16 = arith.constant 0.000000e+00 : f32
    %55 = vector.broadcast %cst_16 : f32 to vector<4x512xf32>
    %56 = arith.maximumf %54, %55 : vector<4x512xf32>
    %c17_i32_17 = arith.constant 17 : i32
    %57 = tpu.dynamic_rotate %56 by %c17_i32_17 dim 1 : vector<4x512xf32>, i32 -> vector<4x512xf32>
    %58 = vector.extract_strided_slice %1 {offsets = [0, 0], sizes = [1, 512], strides = [1, 1]} : vector<8x512xf32> to vector<1x512xf32>
    %59 = vector.broadcast %58 : vector<1x512xf32> to vector<4x512xf32>
    %60 = arith.mulf %57, %59 : vector<4x512xf32>
    %c16_i32_18 = arith.constant 16 : i32
    %61 = tpu.dynamic_rotate %56 by %c16_i32_18 dim 1 : vector<4x512xf32>, i32 -> vector<4x512xf32>
    %62 = vector.extract_strided_slice %1 {offsets = [1, 0], sizes = [1, 512], strides = [1, 1]} : vector<8x512xf32> to vector<1x512xf32>
    %63 = vector.broadcast %62 : vector<1x512xf32> to vector<4x512xf32>
    %64 = arith.mulf %61, %63 : vector<4x512xf32>
    %c15_i32_19 = arith.constant 15 : i32
    %65 = tpu.dynamic_rotate %56 by %c15_i32_19 dim 1 : vector<4x512xf32>, i32 -> vector<4x512xf32>
    %66 = vector.extract_strided_slice %1 {offsets = [2, 0], sizes = [1, 512], strides = [1, 1]} : vector<8x512xf32> to vector<1x512xf32>
    %67 = vector.broadcast %66 : vector<1x512xf32> to vector<4x512xf32>
    %68 = arith.mulf %65, %67 : vector<4x512xf32>
    %69 = tpu.concatenate %60, %64, %68 in 0 : vector<4x512xf32>, vector<4x512xf32>, vector<4x512xf32> -> vector<12x512xf32>
    %70 = arith.truncf %69 : vector<12x512xf32> to vector<12x512xbf16>
    %c0_20 = arith.constant 0 : index
    %c0_21 = arith.constant 0 : index
    %c0_22 = arith.constant 0 : index
    %71 = vector.load %arg3[%c0_20, %c0_21, %c0_22] : memref<3x4x12xbf16, #tpu.memory_space<vmem>>, vector<1x4x12xbf16>
    %72 = vector.shape_cast %71 : vector<1x4x12xbf16> to vector<4x12xbf16>
    %cst_23 = arith.constant dense<0.000000e+00> : vector<4x512xf32>
    %73 = tpu.matmul %72, %70, %cst_23 {dimension_numbers = #tpu.dot_dimension_numbers<[1], [0], [0], [1], [0, 0, 1, 1], [], []>} : vector<4x12xbf16>, vector<12x512xbf16>, vector<4x512xf32> -> vector<4x512xf32>
    %c1_i32_24 = arith.constant 1 : i32
    %74 = tpu.dynamic_rotate %56 by %c1_i32_24 dim 1 : vector<4x512xf32>, i32 -> vector<4x512xf32>
    %75 = vector.extract_strided_slice %1 {offsets = [3, 0], sizes = [1, 512], strides = [1, 1]} : vector<8x512xf32> to vector<1x512xf32>
    %76 = vector.broadcast %75 : vector<1x512xf32> to vector<4x512xf32>
    %77 = arith.mulf %74, %76 : vector<4x512xf32>
    %c511_i32_25 = arith.constant 511 : i32
    %78 = tpu.dynamic_rotate %56 by %c511_i32_25 dim 1 : vector<4x512xf32>, i32 -> vector<4x512xf32>
    %79 = vector.extract_strided_slice %1 {offsets = [4, 0], sizes = [1, 512], strides = [1, 1]} : vector<8x512xf32> to vector<1x512xf32>
    %80 = vector.broadcast %79 : vector<1x512xf32> to vector<4x512xf32>
    %81 = arith.mulf %78, %80 : vector<4x512xf32>
    %82 = tpu.concatenate %77, %56, %81 in 0 : vector<4x512xf32>, vector<4x512xf32>, vector<4x512xf32> -> vector<12x512xf32>
    %83 = arith.truncf %82 : vector<12x512xf32> to vector<12x512xbf16>
    %c1_26 = arith.constant 1 : index
    %c0_27 = arith.constant 0 : index
    %c0_28 = arith.constant 0 : index
    %84 = vector.load %arg3[%c1_26, %c0_27, %c0_28] : memref<3x4x12xbf16, #tpu.memory_space<vmem>>, vector<1x4x12xbf16>
    %85 = vector.shape_cast %84 : vector<1x4x12xbf16> to vector<4x12xbf16>
    %cst_29 = arith.constant dense<0.000000e+00> : vector<4x512xf32>
    %86 = tpu.matmul %85, %83, %cst_29 {dimension_numbers = #tpu.dot_dimension_numbers<[1], [0], [0], [1], [0, 0, 1, 1], [], []>} : vector<4x12xbf16>, vector<12x512xbf16>, vector<4x512xf32> -> vector<4x512xf32>
    %87 = arith.addf %73, %86 : vector<4x512xf32>
    %c497_i32_30 = arith.constant 497 : i32
    %88 = tpu.dynamic_rotate %56 by %c497_i32_30 dim 1 : vector<4x512xf32>, i32 -> vector<4x512xf32>
    %89 = vector.extract_strided_slice %1 {offsets = [5, 0], sizes = [1, 512], strides = [1, 1]} : vector<8x512xf32> to vector<1x512xf32>
    %90 = vector.broadcast %89 : vector<1x512xf32> to vector<4x512xf32>
    %91 = arith.mulf %88, %90 : vector<4x512xf32>
    %c496_i32_31 = arith.constant 496 : i32
    %92 = tpu.dynamic_rotate %56 by %c496_i32_31 dim 1 : vector<4x512xf32>, i32 -> vector<4x512xf32>
    %93 = vector.extract_strided_slice %1 {offsets = [6, 0], sizes = [1, 512], strides = [1, 1]} : vector<8x512xf32> to vector<1x512xf32>
    %94 = vector.broadcast %93 : vector<1x512xf32> to vector<4x512xf32>
    %95 = arith.mulf %92, %94 : vector<4x512xf32>
    %c495_i32_32 = arith.constant 495 : i32
    %96 = tpu.dynamic_rotate %56 by %c495_i32_32 dim 1 : vector<4x512xf32>, i32 -> vector<4x512xf32>
    %97 = vector.extract_strided_slice %1 {offsets = [7, 0], sizes = [1, 512], strides = [1, 1]} : vector<8x512xf32> to vector<1x512xf32>
    %98 = vector.broadcast %97 : vector<1x512xf32> to vector<4x512xf32>
    %99 = arith.mulf %96, %98 : vector<4x512xf32>
    %100 = tpu.concatenate %91, %95, %99 in 0 : vector<4x512xf32>, vector<4x512xf32>, vector<4x512xf32> -> vector<12x512xf32>
    %101 = arith.truncf %100 : vector<12x512xf32> to vector<12x512xbf16>
    %c2_33 = arith.constant 2 : index
    %c0_34 = arith.constant 0 : index
    %c0_35 = arith.constant 0 : index
    %102 = vector.load %arg3[%c2_33, %c0_34, %c0_35] : memref<3x4x12xbf16, #tpu.memory_space<vmem>>, vector<1x4x12xbf16>
    %103 = vector.shape_cast %102 : vector<1x4x12xbf16> to vector<4x12xbf16>
    %cst_36 = arith.constant dense<0.000000e+00> : vector<4x512xf32>
    %104 = tpu.matmul %103, %101, %cst_36 {dimension_numbers = #tpu.dot_dimension_numbers<[1], [0], [0], [1], [0, 0, 1, 1], [], []>} : vector<4x12xbf16>, vector<12x512xbf16>, vector<4x512xf32> -> vector<4x512xf32>
    %105 = arith.addf %87, %104 : vector<4x512xf32>
    %106 = vector.broadcast %3 : vector<4x1xf32> to vector<4x512xf32>
    %107 = arith.addf %105, %106 : vector<4x512xf32>
    %108 = arith.addf %107, %0 : vector<4x512xf32>
    %c0_37 = arith.constant 0 : index
    %c0_38 = arith.constant 0 : index
    %109 = vector.load %arg6[%c0_37, %c0_38] : memref<4x512xf32, #tpu.memory_space<vmem>>, vector<4x512xf32>
    tpu.vector_store %arg6[%c0_37, %c0_38], %108 {strides = array<i32>} : memref<4x512xf32, #tpu.memory_space<vmem>>, vector<4x512xf32>,
    return
  }
  func.func @transform_0(%arg0: i32) -> (i32, i32) {
    %c0_i32 = arith.constant 0 : i32
    %c0_i32_0 = arith.constant 0 : i32
    return %c0_i32, %arg0 : i32, i32
  }
  func.func @transform_1(%arg0: i32) -> (i32, i32, i32) {
    %c0_i32 = arith.constant 0 : i32
    %c0_i32_0 = arith.constant 0 : i32
    %c0_i32_1 = arith.constant 0 : i32
    %c0_i32_2 = arith.constant 0 : i32
    return %c0_i32, %c0_i32_0, %c0_i32_1 : i32, i32, i32
  }
  func.func @transform_2(%arg0: i32) -> (i32, i32, i32) {
    %c0_i32 = arith.constant 0 : i32
    %c0_i32_0 = arith.constant 0 : i32
    %c0_i32_1 = arith.constant 0 : i32
    %c0_i32_2 = arith.constant 0 : i32
    return %c0_i32, %c0_i32_0, %c0_i32_1 : i32, i32, i32
  }
  func.func @transform_3(%arg0: i32) -> (i32, i32) {
    %c0_i32 = arith.constant 0 : i32
    %c0_i32_0 = arith.constant 0 : i32
    %c0_i32_1 = arith.constant 0 : i32
    return %c0_i32, %c0_i32_0 : i32, i32
  }
  func.func @transform_4(%arg0: i32) -> (i32, i32) {
    %c0_i32 = arith.constant 0 : i32
    %c0_i32_0 = arith.constant 0 : i32
    %c0_i32_1 = arith.constant 0 : i32
    return %c0_i32, %c0_i32_0 : i32, i32
  }
  func.func @transform_5(%arg0: i32) -> (i32, i32) {
    %c0_i32 = arith.constant 0 : i32
    %c0_i32_0 = arith.constant 0 : i32
    return %c0_i32, %arg0 : i32, i32
  }
}

</mosaic_0001>

<bundles_post_ra>
// kernel: tpu_custom_call.1
= control target key start
LH: loop header
LB: loop body
LE: loop exit
PB: predicated region body
PF: predicated region fallthrough
CT: control target
= control target key end

     0   :  { %10 = vsyncpa [#allocation3], 0  ;;  %s1895_s0 = inlined_call_operand.hbm [shape: f32[4,512], index: 0, kind: input, shape index: {}]   ;;  %s1896_s1 = inlined_call_operand.vmem [shape: bf16[3,4,12], index: 1, kind: input, shape index: {}]   ;;  %s1897_s2 = inlined_call_operand.hbm [shape: bf16[3,4,12], index: 2, kind: input, shape index: {}]   ;;  %s1898_s3 = inlined_call_operand.vmem [shape: f32[4,2], index: 3, kind: input, shape index: {}]   ;;  %s1899_s4 = inlined_call_operand.hbm [shape: f32[8,512], index: 4, kind: input, shape index: {}]   ;;  %s1900_s5 = inlined_call_operand.hbm [shape: f32[4,512], index: 5, kind: output, shape index: {}]  }
   0x1   :  { %11 = vsyncpa [#allocation6], 0  ;;  %s30_s20 = sshll.u32 %s1897_s2, 4  ;;  %s31_s20 = int_to_ptr.hbm [resolvable:$true] %s30_s20 }
   0x2   :  { %12 = vsyncpa [#allocation4], 0  ;;  %s1216_s21 = smov [#allocation5]   ;;  %s18_s25 = sshll.u32 %s1895_s0, 4  ;;  %s19_s25 = int_to_ptr.hbm [resolvable:$true] %s18_s25 }
   0x3   :  { %s32_s22 = sshll.u32 %s1216_s21, 4  ;;  %s1217_s26 = smov 32   ;;  %s33_s22 = int_to_ptr.vmem [resolvable:$true] %s32_s22 }
   0x4   :  { %s1218_s27 = smov 2   ;;  %s1219_s28 = smov [#allocation2]  }
   0x5   :  { %38 = dma.hbm_to_vmem [thread:$0]  %s31_s20, 96, %s33_s22, [#allocation6], %s1217_s26, %s1217_s26, %s1218_s27  }
   0x6   :  { %s20_s29 = sshll.u32 %s1219_s28, 4  ;;  %s46_s7 = sshll.u32 %s1899_s4, 4  ;;  %s21_s29 = int_to_ptr.vmem [resolvable:$true] %s20_s29  ;;  %s47_s7 = int_to_ptr.hbm [resolvable:$true] %s46_s7 }
   0x7   :  { %23 = dma.hbm_to_vmem [thread:$0]  %s19_s25, 256, %s21_s29, [#allocation3]  }
   0x8   :  { %s1220_s2 = smov [#allocation7]  }
   0x9   :  { %s48_s8 = sshll.u32 %s1220_s2, 4  ;;  %s49_s8 = int_to_ptr.vmem [resolvable:$true] %s48_s8 }
   0xa   :  { %51 = dma.hbm_to_vmem [thread:$0]  %s47_s7, 512, %s49_s8, [#allocation6]  }
   0xb   :  { %1210 = dma.done.wait [#allocation3], 256  }
   0xc   :  { %1211 = vsyncadd [#allocation3], 4294967040 }
   0xd   :  { %1212 = dma.done.wait [#allocation6], 608  }
   0xe   :  { %1213 = vsyncadd [#allocation6], 4294966688  ;;  %v1271_v0 = vld [vmem:[#allocation2 + $0x8] sm:$0xff]  ;;  %v1273_v1 = vld [vmem:[#allocation2] sm:$0xff]  ;;  %s1221_s0 = smov 17   ;;  %s1222_s4 = smov 16   ;;  %v93_v48 = vlaneseq }
   0xf   :  { %76 = vst [vmem:[#allocation1 + $0x10] ss:$2 sm:$0xff] %v1271_v0  ;;  %s1223_s9 = smov 15   ;;  %s1224_s10 = smov 1   ;;  %v1352_v51 = vld [vmem:[#allocation7 + $0x10] sm:$0xff]  ;;  %v1356_v53 = vld [vmem:[#allocation7 + $0x18] sm:$0xff] }
  0x10   :  { %74 = vst [vmem:[#allocation1] ss:$2 sm:$0xff] %v1273_v1  ;;  %s1225_s11 = smov 127   ;;  %s1226_s12 = smov 113   ;;  %v1349_v49 = vand.u32 127, %v93_v48  ;;  %v134_v54 = vperm.slane %v1352_v51, 1 }
  0x11   :  { %s1227_s13 = smov 112   ;;  %s1228_s14 = smov 111   ;;  %v135_v55 = vperm.slane %v1356_v53, 1  ;;  %v102_v59 = vperm.slane %v1352_v51, 0  ;;  %v103_v61 = vperm.slane %v1356_v53, 0  ;;  %v166_v63 = vperm.slane %v1352_v51, 2 }
  0x12   :  { %vm127_vm0 = vcmp.lt.s32.totalorder %v1349_v49, 16  ;;  %vm95_vm1 = vcmp.lt.s32.totalorder %v1349_v49, 17  ;;  %vm159_vm2 = vcmp.lt.s32.totalorder %v1349_v49, 15  ;;  %vm245_vm3 = vcmp.lt.s32.totalorder %v1349_v49, 127  ;;  %s1058_s25 = sshll.u32 %s1900_s5, 4  ;;  %s1059_s25 = int_to_ptr.hbm [resolvable:$true] %s1058_s25 }
  0x13   :  { %vm213_vm4 = vcmp.lt.s32.totalorder %v1349_v49, 1  ;;  %vm184_vm5 = vcmask 1043456   ;;  %vm284_vm6 = vcmask 1045504   ;;  %vm280_vm7 = vcmask 97280  }
  0x14   :  { %vm467_vm8 = vcmp.lt.s32.totalorder %v1349_v49, 112  ;;  %vm435_vm9 = vcmp.lt.s32.totalorder %v1349_v49, 113  ;;  %vm499_vm10 = vcmp.lt.s32.totalorder %v1349_v49, 111 }
  0x16   :  { %v80_v2 = vld.sshfl [vmem:[#allocation1 + $0x18] sm:$0xff pattern:$0x75316420]  ;;  %v79_v3 = vld.sshfl [vmem:[#allocation1 + $0x10] sm:$0xff pattern:$0x75316420] }
  0x17   :  { %91 = vrot.lane.b32.xlu1 %v80_v2, %s1221_s0  ;;  %89 = vrot.lane.b32.xlu0 %v79_v3, %s1221_s0  ;;  %110 = vst [vmem:[#allocation1 + $0x10] ss:$2 sm:$0xff] %v1271_v0  ;;  %v78_v4 = vld.sshfl [vmem:[#allocation1 + $0x8] sm:$0xff pattern:$0x75316420] }
  0x18   :  { %87 = vrot.lane.b32.xlu2 %v78_v4, %s1221_s0  ;;  %v77_v5 = vld.sshfl [vmem:[#allocation1] sm:$0xff pattern:$0x75316420]  ;;  %v220_v4 = vperm.slane %v1352_v51, 3 }
  0x19   :  { %108 = vst [vmem:[#allocation1] ss:$2 sm:$0xff] %v1273_v1 }
  0x1e   :  { %v114_v6 = vld.sshfl [vmem:[#allocation1 + $0x18] sm:$0xff pattern:$0x75316420]  ;;  %v113_v7 = vld.sshfl [vmem:[#allocation1 + $0x10] sm:$0xff pattern:$0x75316420] }
  0x1f   :  { %125 = vrot.lane.b32.xlu1 %v114_v6, %s1222_s4  ;;  %123 = vrot.lane.b32.xlu0 %v113_v7, %s1222_s4  ;;  %142 = vst [vmem:[#allocation1 + $0x10] ss:$2 sm:$0xff] %v1271_v0  ;;  %v253_v6 = vperm.slane %v1356_v53, 4 }
  0x20   :  { %v112_v8 = vld.sshfl [vmem:[#allocation1 + $0x8] sm:$0xff pattern:$0x75316420]  ;;  %v111_v9 = vld.sshfl [vmem:[#allocation1] sm:$0xff pattern:$0x75316420] }
  0x21   :  { %121 = vrot.lane.b32.xlu2 %v112_v8, %s1222_s4  ;;  %140 = vst [vmem:[#allocation1] ss:$2 sm:$0xff] %v1273_v1 }
  0x26   :  { %v146_v10 = vld.sshfl [vmem:[#allocation1 + $0x18] sm:$0xff pattern:$0x75316420]  ;;  %v145_v11 = vld.sshfl [vmem:[#allocation1 + $0x10] sm:$0xff pattern:$0x75316420] }
  0x27   :  { %157 = vrot.lane.b32.xlu1 %v146_v10, %s1223_s9  ;;  %155 = vrot.lane.b32.xlu0 %v145_v11, %s1223_s9  ;;  %196 = vst [vmem:[#allocation1 + $0x10] ss:$2 sm:$0xff] %v1271_v0 }
  0x28   :  { %v144_v12 = vld.sshfl [vmem:[#allocation1 + $0x8] sm:$0xff pattern:$0x75316420]  ;;  %v143_v13 = vld.sshfl [vmem:[#allocation1] sm:$0xff pattern:$0x75316420] }
  0x29   :  { %153 = vrot.lane.b32.xlu2 %v144_v12, %s1223_s9  ;;  %194 = vst [vmem:[#allocation1] ss:$2 sm:$0xff] %v1273_v1 }
  0x2e   :  { %v199_v14 = vld.sshfl [vmem:[#allocation1 + $0x10] sm:$0xff pattern:$0x75316420]  ;;  %v200_v15 = vld.sshfl [vmem:[#allocation1 + $0x18] sm:$0xff pattern:$0x75316420] }
  0x2f   :  { %211 = vrot.lane.b32.xlu1 %v200_v15, %s1224_s10  ;;  %228 = vst [vmem:[#allocation1 + $0x10] ss:$2 sm:$0xff] %v1271_v0 }
  0x30   :  { %v197_v16 = vld.sshfl [vmem:[#allocation1] sm:$0xff pattern:$0x75316420]  ;;  %v198_v17 = vld.sshfl [vmem:[#allocation1 + $0x8] sm:$0xff pattern:$0x75316420] }
  0x31   :  { %207 = vrot.lane.b32.xlu0 %v198_v17, %s1224_s10  ;;  %226 = vst [vmem:[#allocation1] ss:$2 sm:$0xff] %v1273_v1 }
  0x36   :  { %v231_v18 = vld.sshfl [vmem:[#allocation1 + $0x10] sm:$0xff pattern:$0x75316420]  ;;  %v232_v19 = vld.sshfl [vmem:[#allocation1 + $0x18] sm:$0xff pattern:$0x75316420] }
  0x37   :  { %241 = vrot.lane.b32.xlu2 %v231_v18, %s1225_s11  ;;  %261 = vst [vmem:[#allocation1 + $0x11] ss:$2 sm:$0xff] %v1271_v0 }
  0x38   :  { %v229_v20 = vld.sshfl [vmem:[#allocation1] sm:$0xff pattern:$0x75316420]  ;;  %v230_v21 = vld.sshfl [vmem:[#allocation1 + $0x8] sm:$0xff pattern:$0x75316420] }
  0x39   :  { %209 = vrot.lane.b32.xlu0 %v199_v14, %s1224_s10  ;;  %237 = vrot.lane.b32.xlu1 %v229_v20, %s1225_s11  ;;  %259 = vst [vmem:[#allocation1 + $0x1] ss:$2 sm:$0xff] %v1273_v1 }
  0x3e   :  { %v1301_v22 = vld.sshfl [vmem:[#allocation1 + $0x10] sm:$0xff pattern:$0x75316420]  ;;  %v1303_v23 = vld.sshfl [vmem:[#allocation1 + $0x18] sm:$0xff pattern:$0x75316420] }
  0x3f   :  { %243 = vrot.lane.b32.xlu2 %v232_v19, %s1225_s11  ;;  %418 = vst [vmem:[#allocation1 + $0x10] ss:$2 sm:$0xff] %v1271_v0 }
  0x40   :  { %v1307_v24 = vld.sshfl [vmem:[#allocation1] sm:$0xff pattern:$0x75316420]  ;;  %v1309_v25 = vld.sshfl [vmem:[#allocation1 + $0x8] sm:$0xff pattern:$0x75316420] }
  0x41   :  { %205 = vrot.lane.b32.xlu0 %v197_v16, %s1224_s10  ;;  %151 = vrot.lane.b32.xlu1 %v143_v13, %s1223_s9  ;;  %416 = vst [vmem:[#allocation1] ss:$2 sm:$0xff] %v1273_v1 }
  0x46   :  { %v421_v26 = vld.sshfl [vmem:[#allocation1 + $0x10] sm:$0xff pattern:$0x75316420]  ;;  %v422_v27 = vld.sshfl [vmem:[#allocation1 + $0x18] sm:$0xff pattern:$0x75316420] }
  0x47   :  { %119 = vrot.lane.b32.xlu2 %v111_v9, %s1222_s4  ;;  %450 = vst [vmem:[#allocation1 + $0x10] ss:$2 sm:$0xff] %v1271_v0  ;;  %v252_v9 = vperm.slane %v1352_v51, 4 }
  0x48   :  { %v419_v28 = vld.sshfl [vmem:[#allocation1] sm:$0xff pattern:$0x75316420]  ;;  %v420_v29 = vld.sshfl [vmem:[#allocation1 + $0x8] sm:$0xff pattern:$0x75316420] }
  0x49   :  { %85 = vrot.lane.b32.xlu0 %v77_v5, %s1221_s0  ;;  %239 = vrot.lane.b32.xlu1 %v230_v21, %s1225_s11  ;;  %448 = vst [vmem:[#allocation1] ss:$2 sm:$0xff] %v1273_v1  ;;  %v221_v5 = vperm.slane %v1356_v53, 3 }
  0x4e   :  { %v453_v30 = vld.sshfl [vmem:[#allocation1 + $0x10] sm:$0xff pattern:$0x75316420]  ;;  %v454_v31 = vld.sshfl [vmem:[#allocation1 + $0x18] sm:$0xff pattern:$0x75316420] }
  0x4f   :  { %427 = vrot.lane.b32.xlu2 %v419_v28, %s1226_s12  ;;  %482 = vst [vmem:[#allocation1 + $0x10] ss:$2 sm:$0xff] %v1271_v0 }
  0x50   :  { %v452_v32 = vld.sshfl [vmem:[#allocation1 + $0x8] sm:$0xff pattern:$0x75316420]  ;;  %v451_v33 = vld.sshfl [vmem:[#allocation1] sm:$0xff pattern:$0x75316420] }
  0x51   :  { %431 = vrot.lane.b32.xlu0 %v421_v26, %s1226_s12  ;;  %433 = vrot.lane.b32.xlu1 %v422_v27, %s1226_s12  ;;  %480 = vst [vmem:[#allocation1] ss:$2 sm:$0xff] %v1273_v1 }
  0x56   :  { %v485_v34 = vld.sshfl [vmem:[#allocation1 + $0x10] sm:$0xff pattern:$0x75316420]  ;;  %v486_v35 = vld.sshfl [vmem:[#allocation1 + $0x18] sm:$0xff pattern:$0x75316420] }
  0x57   :  { %459 = vrot.lane.b32.xlu2 %v451_v33, %s1227_s13  ;;  %1026 = vst [vmem:[#allocation1 + $0x10] ss:$2 sm:$0xff] %v1271_v0  ;;  %v167_v0 = vperm.slane %v1356_v53, 2 }
  0x58   :  { %v483_v36 = vld.sshfl [vmem:[#allocation1] sm:$0xff pattern:$0x75316420]  ;;  %v484_v37 = vld.sshfl [vmem:[#allocation1 + $0x8] sm:$0xff pattern:$0x75316420] }
  0x59   :  { %463 = vrot.lane.b32.xlu0 %v453_v30, %s1227_s13  ;;  %465 = vrot.lane.b32.xlu1 %v454_v31, %s1227_s13  ;;  %1024 = vst [vmem:[#allocation1] ss:$2 sm:$0xff] %v1273_v1 }
  0x5f   :  { %491 = vrot.lane.b32.xlu2 %v483_v36, %s1228_s14  ;;  %v1434_v36 = vld [vmem:[#allocation7 + $0x8] sm:$0xff] }
  0x61   :  { %495 = vrot.lane.b32.xlu0 %v485_v34, %s1228_s14  ;;  %497 = vrot.lane.b32.xlu1 %v486_v35, %s1228_s14  ;;  %v1432_v35 = vld [vmem:[#allocation7] sm:$0xff] }
  0x67   :  { %461 = vrot.lane.b32.xlu2 %v452_v32, %s1227_s13 }
  0x69   :  { %429 = vrot.lane.b32.xlu0 %v420_v29, %s1226_s12  ;;  %493 = vrot.lane.b32.xlu1 %v484_v37, %s1228_s14 }
  0x72   :  { %v1335_v38 = vpop.permute.xlu2 %87 }
  0x7b   :  { %v1337_v39 = vpop.permute.xlu2 %121 }
  0x83   :  { %v1341_v42 = vpop.permute.xlu2 %153 }
  0x89   :  { %v1339_v40 = vpop.permute.xlu1 %91  ;;  %v90_v41 = vpop.permute.xlu0 %89 }
  0x8a   :  { %v97_v1 = vsel %vm95_vm1, %v1335_v38, %v90_v41  ;;  %v96_v7 = vsel %vm95_vm1, %v90_v41, %v1339_v40 }
  0x8b   :  { %v106_v11 = vmul.f32 %v102_v59, %v97_v1  ;;  %v107_v21 = vmul.f32 %v103_v61, %v96_v7  ;;  %v218_v7 = vperm.slane %v1432_v35, 3 }
  0x91   :  { %v1343_v43 = vpop.permute.xlu1 %125  ;;  %v124_v44 = vpop.permute.xlu0 %123 }
  0x92   :  { %v1345_v45 = vpop.permute.xlu2 %241  ;;  %v129_v56 = vsel %vm127_vm0, %v1337_v39, %v124_v44  ;;  %v128_v58 = vsel %vm127_vm0, %v124_v44, %v1343_v43 }
  0x93   :  { %v138_v60 = vmul.f32 %v134_v54, %v129_v56  ;;  %v139_v62 = vmul.f32 %v135_v55, %v128_v58 }
  0x95   :  { %v178_v8 = vrot.slane %v138_v60, 4  ;;  %v179_v12 = vrot.slane %v139_v62, 4  ;;  %v1069_v62 = vld [vmem:[%s1896_s1 + $0x2] sm:$0x3] }
  0x97   :  { %v187_v30 = vsel %vm184_vm5, %v106_v11, %v178_v8  ;;  %v188_v34 = vsel %vm184_vm5, %v107_v21, %v179_v12  ;;  %v219_v8 = vperm.slane %v1434_v36, 3  ;;  %v100_v12 = vperm.slane %v1432_v35, 0 }
  0x99   :  { %v1347_v46 = vpop.permute.xlu1 %157  ;;  %v156_v47 = vpop.permute.xlu0 %155 }
  0x9a   :  { %v244_v50 = vpop.permute.xlu2 %243  ;;  %v161_v2 = vsel %vm159_vm2, %v1341_v42, %v156_v47  ;;  %v160_v3 = vsel %vm159_vm2, %v156_v47, %v1347_v46 }
  0x9b   :  { %v170_v13 = vmul.f32 %v166_v63, %v161_v2  ;;  %v246_v14 = vsel %vm245_vm3, %v1345_v45, %v244_v50  ;;  %v171_v17 = vmul.f32 %v167_v0, %v160_v3 }
  0x9c   :  { %v256_v29 = vmul.f32 %v252_v9, %v246_v14  ;;  %v250_v14 = vperm.slane %v1432_v35, 4 }
  0x9d   :  { %v191_v33 = vpack.c.bf16 %v170_v13, %v187_v30  ;;  %v192_v44 = vpack.c.bf16 %v171_v17, %v188_v34  ;;  %v101_v13 = vperm.slane %v1434_v36, 0 }
  0x9f   :  { %v359_v60 = vsel %vm284_vm6, %v191_v33, 0  ;;  %v362_v3 = vsel %vm284_vm6, %v192_v44, 0 }
  0xa1   :  { %v1354_v52 = vpop.permute.xlu1 %211 }
  0xa2   :  { %v120_v10 = vpop.permute.xlu2 %119 }
  0xa3   :  { %v1363_v57 = vpop.permute.xlu0 %207  ;;  %v130_v1 = vsel %vm127_vm0, %v120_v10, %v1337_v39  ;;  %v131_v2 = vsel %vm127_vm0, %v1343_v43, %v120_v10 }
  0xaa   :  { %v1436_v47 = vpop.permute.xlu2 %427 }
  0xab   :  { %v210_v15 = vpop.permute.xlu0 %209  ;;  %v1403_v16 = vpop.permute.xlu1 %237 }
  0xac   :  { %v214_v18 = vsel %vm213_vm4, %v210_v15, %v1354_v52  ;;  %v215_v19 = vsel %vm213_vm4, %v1363_v57, %v210_v15  ;;  %v249_v20 = vsel %vm245_vm3, %v244_v50, %v1403_v16  ;;  %v132_v50 = vperm.slane %v1432_v35, 1 }
  0xad   :  { %v224_v26 = vmul.f32 %v220_v4, %v215_v19  ;;  %v225_v27 = vmul.f32 %v221_v5, %v214_v18  ;;  %v257_v28 = vmul.f32 %v253_v6, %v249_v20  ;;  %v251_v15 = vperm.slane %v1434_v36, 4 }
  0xae   :  { %v136_v11 = vmul.f32 %v132_v50, %v131_v2  ;;  %v165_v19 = vperm.slane %v1434_v36, 2 }
  0xaf   :  { %v272_v31 = vsel %vm184_vm5, %v224_v26, %v1301_v22  ;;  %v273_v32 = vsel %vm184_vm5, %v225_v27, %v1303_v23  ;;  %v133_v23 = vperm.slane %v1434_v36, 1 }
  0xb0   :  { %v276_v37 = vpack.c.bf16 %v256_v29, %v272_v31  ;;  %v277_v41 = vpack.c.bf16 %v257_v28, %v273_v32  ;;  %v176_v20 = vrot.slane %v136_v11, 4  ;;  %v193_v11 = vld [vmem:[%s1896_s1] sm:$0x3] }
  0xb1   :  { %v137_v39 = vmul.f32 %v133_v23, %v130_v1 }
  0xb2   :  { %v292_v48 = vsel %vm284_vm6, %v276_v37, 0  ;;  %v295_v22 = vsel %vm284_vm6, %v277_v41, 0  ;;  %v460_v29 = vpop.permute.xlu2 %459 }
  0xb3   :  { %330 = vmatpush.bf16.msra.mxu2 %v292_v48  ;;  %v206_v56 = vpop.permute.xlu0 %205  ;;  %343 = vmatpush.bf16.msra.mxu3 %v295_v22  ;;  %v152_v58 = vpop.permute.xlu1 %151 }
  0xb4   :  { %v216_v43 = vsel %vm213_vm4, %v206_v56, %v1363_v57  ;;  %v217_v10 = vsel %vm213_vm4, %v1354_v52, %v206_v56  ;;  %v164_v57 = vperm.slane %v1432_v35, 2  ;;  %v177_v52 = vrot.slane %v137_v39, 4 }
  0xb5   :  { %v222_v17 = vmul.f32 %v218_v7, %v217_v10  ;;  %v223_v18 = vmul.f32 %v219_v8, %v216_v43  ;;  %v162_v21 = vsel %vm159_vm2, %v152_v58, %v1341_v42  ;;  %v163_v26 = vsel %vm159_vm2, %v1347_v46, %v152_v58  ;;  %v1531_v43 = vld [vmem:[%s1898_s3] sm:$0xf] }
  0xb6   :  { %1072 = vmatmul.msk.bf16.vlgmr.msra.gmra.mxu2 %vm280_vm7, %v1069_v62  ;;  %1073 = vmatmul.msk.bf16.vlgmr.msra.gmra.mxu3 %vm280_vm7, %v1069_v62  ;;  %v168_v34 = vmul.f32 %v164_v57, %v163_v26  ;;  %v1229_v10 = vmov 0  }
  0xb7   :  { %397 = vmatpush.bf16.msrb.mxu2 %v359_v60  ;;  %410 = vmatpush.bf16.msrb.mxu3 %v362_v3  ;;  %v271_v37 = vsel %vm184_vm5, %v223_v18, %v1309_v25  ;;  %v475_v18 = vperm.slane %v1356_v53, 6 }
  0xb8   :  { %1111 = vset.pattern.permute.xlu2 %v1229_v10 }
  0xb9   :  { %607 = vperm.xlu2 %1111, %v1531_v43  }
  0xba   :  { %v1524_v39 = vpop.permute.xlu2 %491 }
  0xbb   :  { %v86_v27 = vpop.permute.xlu0 %85  ;;  %v240_v28 = vpop.permute.xlu1 %239 }
  0xbc   :  { %v98_v30 = vsel %vm95_vm1, %v86_v27, %v1335_v38  ;;  %v99_v31 = vsel %vm95_vm1, %v1339_v40, %v86_v27  ;;  %v247_v32 = vsel %vm245_vm3, %v240_v28, %v1345_v45  ;;  %v248_v42 = vsel %vm245_vm3, %v1403_v16, %v240_v28 }
  0xbd   :  { %v104_v46 = vmul.f32 %v100_v12, %v99_v31  ;;  %v105_v33 = vmul.f32 %v101_v13, %v98_v30  ;;  %v254_v38 = vmul.f32 %v250_v14, %v248_v42  ;;  %v255_v40 = vmul.f32 %v251_v15, %v247_v32 }
  0xbe   :  { %v169_v45 = vmul.f32 %v165_v19, %v162_v21  ;;  %v270_v16 = vsel %vm184_vm5, %v222_v17, %v1307_v24  ;;  %v474_v17 = vperm.slane %v1352_v51, 6  ;;  %v442_v28 = vperm.slane %v1352_v51, 5 }
  0xbf   :  { %v274_v41 = vpack.c.bf16 %v254_v38, %v270_v16  ;;  %v275_v44 = vpack.c.bf16 %v255_v40, %v271_v37  ;;  %v185_v48 = vsel %vm184_vm5, %v104_v46, %v176_v20  ;;  %v186_v22 = vsel %vm184_vm5, %v105_v33, %v177_v52 }
  0xc0   :  { %v189_v56 = vpack.c.bf16 %v168_v34, %v185_v48  ;;  %v190_v58 = vpack.c.bf16 %v169_v45, %v186_v22  ;;  %v443_v30 = vperm.slane %v1356_v53, 5  ;;  %v506_v46 = vperm.slane %v1352_v51, 7 }
  0xc1   :  { %v286_v60 = vsel %vm284_vm6, %v274_v41, 0  ;;  %v289_v1 = vsel %vm284_vm6, %v275_v44, 0  ;;  %v507_v33 = vperm.slane %v1356_v53, 7  ;;  %v472_v45 = vperm.slane %v1432_v35, 6 }
  0xc2   :  { %304 = vmatpush.bf16.msra.mxu0 %v286_v60  ;;  %317 = vmatpush.bf16.msra.mxu1 %v289_v1  ;;  %v353_v2 = vsel %vm284_vm6, %v189_v56, 0  ;;  %v356_v24 = vsel %vm284_vm6, %v190_v58, 0  ;;  %v462_v32 = vpop.permute.xlu2 %461  ;;  %v473_v37 = vperm.slane %v1434_v36, 6 }
  0xc3   :  { %v1517_v3 = vpop.permute.xlu0 %431  ;;  %v434_v25 = vpop.permute.xlu1 %433  ;;  %v470_v16 = vsel %vm467_vm8, %v460_v29, %v462_v32 }
  0xc4   :  { %v436_v31 = vsel %vm435_vm9, %v1517_v3, %v434_v25  ;;  %v439_v42 = vsel %vm435_vm9, %v434_v25, %v1436_v47 }
  0xc5   :  { %1070 = vmatmul.msk.bf16.vlgmr.msra.gmra.mxu0 %vm280_vm7, %v1069_v62  ;;  %1071 = vmatmul.msk.bf16.vlgmr.msra.gmra.mxu1 %vm280_vm7, %v1069_v62  ;;  %v446_v34 = vmul.f32 %v442_v28, %v436_v31  ;;  %v447_v48 = vmul.f32 %v443_v30, %v439_v42  ;;  %v1078_v31 = vld [vmem:[%s1896_s1 + $0x4] sm:$0x3]  ;;  %s1231_s1 = smov [#allocation8]  }
  0xc6   :  { %371 = vmatpush.bf16.msrb.mxu0 %v353_v2  ;;  %384 = vmatpush.bf16.msrb.mxu1 %v356_v24  ;;  %v476_v24 = vmul.f32 %v472_v45, %v470_v16  ;;  %s1056_s22 = sshll.u32 %s1231_s1, 4  ;;  %s1057_s22 = int_to_ptr.vmem [resolvable:$true] %s1056_s22 }
  0xc7   :  { %1076 = vmatmul.msk.bf16.vlgmr.msrb.gmra.mxu2 %vm280_vm7, %v193_v11  ;;  %1077 = vmatmul.msk.bf16.vlgmr.msrb.gmra.mxu3 %vm280_vm7, %v193_v11 }
  0xcb   :  { %v464_v62 = vpop.permute.xlu0 %463  ;;  %v466_v20 = vpop.permute.xlu1 %465 }
  0xcc   :  { %v468_v52 = vsel %vm467_vm8, %v464_v62, %v466_v20  ;;  %v471_v21 = vsel %vm467_vm8, %v466_v20, %v460_v29  ;;  %v469_v22 = vsel %vm467_vm8, %v462_v32, %v464_v62  ;;  %v440_v20 = vperm.slane %v1432_v35, 5 }
  0xcd   :  { %v478_v26 = vmul.f32 %v474_v17, %v468_v52  ;;  %v479_v27 = vmul.f32 %v475_v18, %v471_v21  ;;  %v477_v25 = vmul.f32 %v473_v37, %v469_v22  ;;  %v1901_v52 = vperm.slane %v1434_v36, 5 }
  0xce   :  { %v516_v32 = vrot.slane %v476_v24, 4 }
  0xcf   :  { %v518_v38 = vrot.slane %v478_v26, 4  ;;  %v519_v40 = vrot.slane %v479_v27, 4  ;;  %v504_v26 = vperm.slane %v1432_v35, 7  ;;  %v505_v27 = vperm.slane %v1434_v36, 7 }
  0xd0   :  { %v517_v42 = vrot.slane %v477_v25, 4 }
  0xd1   :  { %v526_v1 = vsel %vm184_vm5, %v446_v34, %v518_v38  ;;  %v527_v2 = vsel %vm184_vm5, %v447_v48, %v519_v40 }
  0xd3   :  { %v496_v41 = vpop.permute.xlu0 %495  ;;  %v498_v44 = vpop.permute.xlu1 %497 }
  0xd4   :  { %v500_v56 = vsel %vm499_vm10, %v496_v41, %v498_v44  ;;  %v503_v58 = vsel %vm499_vm10, %v498_v44, %v1524_v39 }
  0xd5   :  { %v510_v29 = vmul.f32 %v506_v46, %v500_v56  ;;  %v511_v60 = vmul.f32 %v507_v33, %v503_v58  ;;  %1074 = vmatmul.msk.bf16.vlgmr.msrb.gmra.mxu0 %vm280_vm7, %v193_v11  ;;  %1075 = vmatmul.msk.bf16.vlgmr.msrb.gmra.mxu1 %vm280_vm7, %v193_v11 }
  0xd7   :  { %v530_v10 = vpack.c.bf16 %v510_v29, %v526_v1  ;;  %v531_v62 = vpack.c.bf16 %v511_v60, %v527_v2 }
  0xd9   :  { %v544_v21 = vsel %vm284_vm6, %v530_v10, 0  ;;  %v547_v11 = vsel %vm284_vm6, %v531_v62, 0 }
  0xda   :  { %582 = vmatpush.bf16.msra.mxu2 %v544_v21  ;;  %595 = vmatpush.bf16.msra.mxu3 %v547_v11 }
  0xdb   :  { %v430_v38 = vpop.permute.xlu0 %429  ;;  %v494_v40 = vpop.permute.xlu1 %493 }
  0xdc   :  { %v437_v34 = vsel %vm435_vm9, %v430_v38, %v1517_v3  ;;  %v438_v16 = vsel %vm435_vm9, %v1436_v47, %v430_v38  ;;  %v501_v44 = vsel %vm499_vm10, %v494_v40, %v496_v41  ;;  %v502_v48 = vsel %vm499_vm10, %v1524_v39, %v494_v40 }
  0xdd   :  { %v444_v22 = vmul.f32 %v440_v20, %v438_v16  ;;  %v445_v56 = vmul.f32 %v1901_v52, %v437_v34  ;;  %v508_v3 = vmul.f32 %v504_v26, %v502_v48  ;;  %v509_v58 = vmul.f32 %v505_v27, %v501_v44  ;;  %1081 = vmatmul.msk.bf16.vlgmr.msra.gmra.mxu2 %vm280_vm7, %v1078_v31  ;;  %v1726_v52 = vld [vmem:[#allocation5] sm:$0x3] }
  0xde   :  { %1082 = vmatmul.msk.bf16.vlgmr.msra.gmra.mxu3 %vm280_vm7, %v1078_v31 }
  0xdf   :  { %v524_v47 = vsel %vm184_vm5, %v444_v22, %v516_v32  ;;  %v525_v39 = vsel %vm184_vm5, %v445_v56, %v517_v42 }
  0xe0   :  { %v528_v41 = vpack.c.bf16 %v508_v3, %v524_v47  ;;  %v529_v29 = vpack.c.bf16 %v509_v58, %v525_v39 }
  0xe2   :  { %v538_v60 = vsel %vm284_vm6, %v528_v41, 0  ;;  %v541_v1 = vsel %vm284_vm6, %v529_v29, 0 }
  0xe3   :  { %556 = vmatpush.bf16.msra.mxu0 %v538_v60  ;;  %569 = vmatpush.bf16.msra.mxu1 %v541_v1 }
  0xe6   :  { %1079 = vmatmul.msk.bf16.vlgmr.msra.gmra.mxu0 %vm280_vm7, %v1078_v31  ;;  %1080 = vmatmul.msk.bf16.vlgmr.msra.gmra.mxu1 %vm280_vm7, %v1078_v31 }
 0x113   :  { %v608_v39 = vpop.permute.xlu2 %607 }
 0x139   :  { %v332_v2 = vpop.f32.mrf.mxu2  ;;  %v345_v24 = vpop.f32.mrf.mxu3 }
 0x141   :  { %v334_v25 = vpop.f32.mrf.mxu2  ;;  %v347_v10 = vpop.f32.mrf.mxu3 }
 0x142   :  { %v306_v62 = vpop.f32.mrf.mxu0  ;;  %v319_v21 = vpop.f32.mrf.mxu1 }
 0x14a   :  { %v399_v11 = vpop.f32.mrf.mxu2  ;;  %v412_v32 = vpop.f32.mrf.mxu3 }
 0x14b   :  { %v308_v42 = vpop.f32.mrf.mxu0  ;;  %v321_v38 = vpop.f32.mrf.mxu1  ;;  %v413_v40 = vadd.f32 %v412_v32, %v345_v24 }
 0x152   :  { %v401_v34 = vpop.f32.mrf.mxu2  ;;  %v414_v16 = vpop.f32.mrf.mxu3 }
 0x153   :  { %v373_v44 = vpop.f32.mrf.mxu0  ;;  %v386_v48 = vpop.f32.mrf.mxu1  ;;  %v400_v34 = vadd.f32 %v399_v11, %v332_v2 }
 0x154   :  { %v374_v31 = vadd.f32 %v373_v44, %v306_v62  ;;  %v387_v47 = vadd.f32 %v386_v48, %v319_v21 }
 0x15b   :  { %v375_v22 = vpop.f32.mrf.mxu0  ;;  %v388_v56 = vpop.f32.mrf.mxu1 }
 0x160   :  { %v584_v3 = vpop.f32.mrf.mxu2 }
 0x161   :  { %v597_v58 = vpop.f32.mrf.mxu3  ;;  %v603_v16 = vadd.f32 %v584_v3, %v400_v34 }
 0x162   :  { %v604_v2 = vadd.f32 %v597_v58, %v413_v40 }
 0x163   :  { %v558_v41 = vpop.f32.mrf.mxu0  ;;  %v571_v29 = vpop.f32.mrf.mxu1  ;;  %v612_v44 = vadd.f32 %v608_v39, %v603_v16 }
 0x164   :  { %v601_v60 = vadd.f32 %v558_v41, %v374_v31  ;;  %v602_v1 = vadd.f32 %v571_v29, %v387_v47  ;;  %v613_v11 = vadd.f32 %v608_v39, %v604_v2 }
 0x165   :  { %v1635_v48 = vmax.f32 %v612_v44, 0.0 }
 0x166   :  { %v610_v25 = vadd.f32 %v608_v39, %v601_v60  ;;  %v611_v10 = vadd.f32 %v608_v39, %v602_v1  ;;  %v1649_v22 = vmax.f32 %v613_v11, 0.0 }
 0x168   :  { %v1620_v42 = vmax.f32 %v610_v25, 0.0  ;;  %v615_v24 = vmax.f32 %v611_v10, 0.0  ;;  %v586_v32 = vpop.f32.mrf.mxu2 }
 0x169   :  { %v599_v38 = vpop.f32.mrf.mxu3 }
 0x16a   :  { %689 = vrot.lane.b32.xlu1 %v615_v24, %s1224_s10  ;;  %687 = vrot.lane.b32.xlu0 %v1620_v42, %s1224_s10  ;;  %v724_v25 = vrot.slane %v615_v24, 4 }
 0x16b   :  { %703 = vrot.lane.b32.xlu2 %v1620_v42, %s1225_s11  ;;  %v560_v62 = vpop.f32.mrf.mxu0  ;;  %v573_v21 = vpop.f32.mrf.mxu1 }
 0x16c   :  { %v1698_v21 = vld [vmem:[#allocation5 + $0x2] sm:$0x3] }
 0x172   :  { %705 = vrot.lane.b32.xlu1 %v615_v24, %s1225_s11  ;;  %636 = vrot.lane.b32.xlu0 %v615_v24, %s1222_s4 }
 0x173   :  { %634 = vrot.lane.b32.xlu2 %v1620_v42, %s1222_s4 }
 0x17a   :  { %652 = vrot.lane.b32.xlu1 %v615_v24, %s1223_s9  ;;  %620 = vrot.lane.b32.xlu0 %v615_v24, %s1221_s0 }
 0x17b   :  { %891 = vrot.lane.b32.xlu2 %v1620_v42, %s1227_s13 }
 0x182   :  { %650 = vrot.lane.b32.xlu1 %v1620_v42, %s1223_s9  ;;  %618 = vrot.lane.b32.xlu0 %v1620_v42, %s1221_s0 }
 0x183   :  { %707 = vrot.lane.b32.xlu2 %v1635_v48, %s1225_s11 }
 0x18a   :  { %875 = vrot.lane.b32.xlu1 %v1620_v42, %s1226_s12  ;;  %691 = vrot.lane.b32.xlu0 %v1635_v48, %s1224_s10 }
 0x18b   :  { %638 = vrot.lane.b32.xlu2 %v1635_v48, %s1222_s4 }
 0x192   :  { %693 = vrot.lane.b32.xlu1 %v1649_v22, %s1224_s10  ;;  %709 = vrot.lane.b32.xlu0 %v1649_v22, %s1225_s11 }
 0x193   :  { %624 = vrot.lane.b32.xlu2 %v1649_v22, %s1221_s0 }
 0x19a   :  { %622 = vrot.lane.b32.xlu1 %v1635_v48, %s1221_s0  ;;  %640 = vrot.lane.b32.xlu0 %v1649_v22, %s1222_s4 }
 0x19b   :  { %656 = vrot.lane.b32.xlu2 %v1649_v22, %s1223_s9 }
 0x1a2   :  { %654 = vrot.lane.b32.xlu1 %v1635_v48, %s1223_s9  ;;  %897 = vrot.lane.b32.xlu0 %v1649_v22, %s1227_s13 }
 0x1a3   :  { %881 = vrot.lane.b32.xlu2 %v1649_v22, %s1226_s12 }
 0x1aa   :  { %907 = vrot.lane.b32.xlu1 %v1620_v42, %s1228_s14  ;;  %895 = vrot.lane.b32.xlu0 %v1635_v48, %s1227_s13 }
 0x1ab   :  { %913 = vrot.lane.b32.xlu2 %v1649_v22, %s1228_s14 }
 0x1b2   :  { %911 = vrot.lane.b32.xlu1 %v1635_v48, %s1228_s14  ;;  %879 = vrot.lane.b32.xlu0 %v1635_v48, %s1226_s12 }
 0x1b3   :  { %893 = vrot.lane.b32.xlu2 %v615_v24, %s1227_s13 }
 0x1ba   :  { %909 = vrot.lane.b32.xlu1 %v615_v24, %s1228_s14  ;;  %877 = vrot.lane.b32.xlu0 %v615_v24, %s1226_s12 }
 0x1c5   :  { %v704_v40 = vpop.permute.xlu2 %703 }
 0x1cd   :  { %v1682_v56 = vpop.permute.xlu2 %634 }
 0x1d5   :  { %v1684_v3 = vpop.permute.xlu2 %891 }
 0x1dc   :  { %v690_v58 = vpop.permute.xlu1 %689  ;;  %v688_v31 = vpop.permute.xlu0 %687 }
 0x1dd   :  { %v697_v47 = vsel %vm213_vm4, %v688_v31, %v690_v58  ;;  %v708_v41 = vpop.permute.xlu2 %707 }
 0x1de   :  { %v700_v39 = vmul.f32 %v697_v47, %v219_v8 }
 0x1e0   :  { %v732_v32 = vsel %vm184_vm5, %v700_v39, %v724_v25 }
 0x1e4   :  { %v706_v29 = vpop.permute.xlu1 %705  ;;  %v1690_v60 = vpop.permute.xlu0 %636 }
 0x1e5   :  { %v712_v1 = vsel %vm245_vm3, %v706_v29, %v708_v41  ;;  %v639_v24 = vpop.permute.xlu2 %638 }
 0x1e6   :  { %v716_v10 = vmul.f32 %v712_v1, %v251_v15  ;;  %v644_v15 = vsel %vm127_vm0, %v1682_v56, %v1690_v60 }
 0x1e7   :  { %v647_v16 = vmul.f32 %v644_v15, %v133_v23 }
 0x1e8   :  { %v736_v38 = vpack.c.bf16 %v716_v10, %v732_v32 }
 0x1e9   :  { %v671_v39 = vrot.slane %v647_v16, 4 }
 0x1ea   :  { %v748_v62 = vsel %vm284_vm6, %v736_v38, 0 }
 0x1eb   :  { %776 = vmatpush.bf16.msrb.mxu1 %v748_v62 }
 0x1ec   :  { %v1700_v8 = vpop.permute.xlu1 %652  ;;  %v1702_v34 = vpop.permute.xlu0 %620 }
 0x1ed   :  { %v625_v23 = vpop.permute.xlu2 %624 }
 0x1ee   :  { %1084 = vmatmul.msk.bf16.vlgmr.msrb.gmra.mxu1 %vm280_vm7, %v1698_v21 }
 0x1f4   :  { %v651_v44 = vpop.permute.xlu1 %650  ;;  %v619_v2 = vpop.permute.xlu0 %618 }
 0x1f5   :  { %v660_v11 = vsel %vm159_vm2, %v651_v44, %v1700_v8  ;;  %v628_v47 = vsel %vm95_vm1, %v619_v2, %v1702_v34  ;;  %v657_v16 = vpop.permute.xlu2 %656 }
 0x1f6   :  { %v663_v1 = vmul.f32 %v660_v11, %v165_v19  ;;  %v631_v25 = vmul.f32 %v628_v47, %v101_v13  ;;  %v713_v11 = vsel %vm245_vm3, %v704_v40, %v706_v29 }
 0x1f8   :  { %v679_v10 = vsel %vm184_vm5, %v631_v25, %v671_v39  ;;  %v725_v39 = vrot.slane %v1635_v48, 4 }
 0x1f9   :  { %v683_v32 = vpack.c.bf16 %v663_v1, %v679_v10  ;;  %v726_v1 = vrot.slane %v1649_v22, 4  ;;  %v723_v10 = vrot.slane %v1620_v42, 4 }
 0x1fb   :  { %v815_v38 = vsel %vm284_vm6, %v683_v32, 0 }
 0x1fc   :  { %v1724_v62 = vpop.permute.xlu1 %875  ;;  %v692_v15 = vpop.permute.xlu0 %691  ;;  %843 = vmatpush.bf16.msra.mxu1 %v815_v38 }
 0x1fd   :  { %v696_v19 = vsel %vm213_vm4, %v690_v58, %v692_v15 }
 0x1fe   :  { %v701_v13 = vmul.f32 %v696_v19, %v220_v4 }
 0x1ff   :  { %1088 = vmatmul.msk.bf16.vlgmr.msra.gmra.mxu1 %vm280_vm7, %v1726_v52 }
 0x204   :  { %v694_v47 = vpop.permute.xlu1 %693  ;;  %v710_v25 = vpop.permute.xlu0 %709 }
 0x205   :  { %v695_v32 = vsel %vm213_vm4, %v692_v15, %v694_v47  ;;  %v698_v58 = vsel %vm213_vm4, %v694_v47, %v688_v31  ;;  %v711_v4 = vsel %vm245_vm3, %v708_v41, %v710_v25  ;;  %v714_v29 = vsel %vm245_vm3, %v710_v25, %v704_v40 }
 0x206   :  { %v699_v48 = vmul.f32 %v698_v58, %v218_v7  ;;  %v702_v22 = vmul.f32 %v695_v32, %v221_v5  ;;  %v717_v42 = vmul.f32 %v711_v4, %v252_v9  ;;  %v718_v38 = vmul.f32 %v714_v29, %v253_v6 }
 0x207   :  { %v715_v31 = vmul.f32 %v713_v11, %v250_v14  ;;  %v733_v41 = vsel %vm184_vm5, %v701_v13, %v725_v39  ;;  %v643_v14 = vsel %vm127_vm0, %v1690_v60, %v639_v24  ;;  %v629_v13 = vsel %vm95_vm1, %v625_v23, %v619_v2 }
 0x208   :  { %v734_v15 = vsel %vm184_vm5, %v702_v22, %v726_v1  ;;  %v737_v40 = vpack.c.bf16 %v717_v42, %v733_v41  ;;  %v731_v19 = vsel %vm184_vm5, %v699_v48, %v723_v10  ;;  %v661_v1 = vsel %vm159_vm2, %v657_v16, %v651_v44  ;;  %v1775_v10 = vpop.permute.xlu2 %881 }
 0x209   :  { %v738_v7 = vpack.c.bf16 %v718_v38, %v734_v15  ;;  %v735_v47 = vpack.c.bf16 %v715_v31, %v731_v19  ;;  %v1230_v19 = vmov 1  }
 0x20a   :  { %v751_v5 = vsel %vm284_vm6, %v737_v40, 0  ;;  %1112 = vset.pattern.permute.xlu2 %v1230_v19  ;;  %1113 = vset.pattern.permute.xlu0 %v1230_v19 }
 0x20b   :  { %789 = vmatpush.bf16.msrb.mxu2 %v751_v5  ;;  %v754_v9 = vsel %vm284_vm6, %v738_v7, 0  ;;  %v745_v25 = vsel %vm284_vm6, %v735_v47, 0  ;;  %1017 = vperm.xlu2 %1112, %v1531_v43  }
 0x20c   :  { %v623_v6 = vpop.permute.xlu1 %622  ;;  %v641_v32 = vpop.permute.xlu0 %640  ;;  %802 = vmatpush.bf16.msrb.mxu3 %v754_v9  ;;  %763 = vmatpush.bf16.msrb.mxu0 %v745_v25 }
 0x20d   :  { %v642_v11 = vsel %vm127_vm0, %v639_v24, %v641_v32  ;;  %v645_v39 = vsel %vm127_vm0, %v641_v32, %v1682_v56  ;;  %v648_v56 = vmul.f32 %v643_v14, %v134_v54  ;;  %v630_v24 = vmul.f32 %v629_v13, %v100_v12 }
 0x20e   :  { %v646_v58 = vmul.f32 %v645_v39, %v132_v50  ;;  %1085 = vmatmul.msk.bf16.vlgmr.msrb.gmra.mxu2 %vm280_vm7, %v1698_v21  ;;  %v649_v60 = vmul.f32 %v642_v11, %v135_v55  ;;  %v627_v50 = vsel %vm95_vm1, %v1702_v34, %v623_v6  ;;  %v662_v55 = vmul.f32 %v661_v1, %v164_v57 }
 0x20f   :  { %1086 = vmatmul.msk.bf16.vlgmr.msrb.gmra.mxu3 %vm280_vm7, %v1698_v21  ;;  %1083 = vmatmul.msk.bf16.vlgmr.msrb.gmra.mxu0 %vm280_vm7, %v1698_v21  ;;  %v626_v2 = vsel %vm95_vm1, %v623_v6, %v625_v23  ;;  %v632_v21 = vmul.f32 %v627_v50, %v102_v59  ;;  %v672_v48 = vrot.slane %v648_v56, 4 }
 0x210   :  { %v670_v44 = vrot.slane %v646_v58, 4  ;;  %v673_v54 = vrot.slane %v649_v60, 4  ;;  %v633_v12 = vmul.f32 %v626_v2, %v103_v61  ;;  %v914_v41 = vpop.permute.xlu2 %913 }
 0x211   :  { %v680_v31 = vsel %vm184_vm5, %v632_v21, %v672_v48 }
 0x212   :  { %v678_v4 = vsel %vm184_vm5, %v630_v24, %v670_v44 }
 0x213   :  { %v682_v29 = vpack.c.bf16 %v662_v55, %v678_v4 }
 0x214   :  { %v655_v22 = vpop.permute.xlu1 %654  ;;  %v898_v34 = vpop.permute.xlu0 %897 }
 0x215   :  { %v658_v42 = vsel %vm159_vm2, %v655_v22, %v657_v16  ;;  %v659_v57 = vsel %vm159_vm2, %v1700_v8, %v655_v22  ;;  %v902_v23 = vsel %vm467_vm8, %v898_v34, %v1684_v3  ;;  %v812_v59 = vsel %vm284_vm6, %v682_v29, 0 }
 0x216   :  { %v664_v38 = vmul.f32 %v659_v57, %v166_v63  ;;  %v665_v61 = vmul.f32 %v658_v42, %v167_v0  ;;  %830 = vmatpush.bf16.msra.mxu0 %v812_v59  ;;  %v681_v16 = vsel %vm184_vm5, %v633_v12, %v673_v54  ;;  %v906_v8 = vmul.f32 %v902_v23, %v475_v18 }
 0x217   :  { %v886_v63 = vsel %vm435_vm9, %v1775_v10, %v1724_v62  ;;  %v1902_v12 = vperm.slane %v1434_v36, 5 }
 0x218   :  { %v684_v15 = vpack.c.bf16 %v664_v38, %v680_v31  ;;  %v685_v40 = vpack.c.bf16 %v665_v61, %v681_v16  ;;  %v930_v47 = vrot.slane %v906_v8, 4  ;;  %v890_v9 = vmul.f32 %v886_v63, %v443_v30  ;;  %v894_v14 = vpop.permute.xlu2 %893 }
 0x219   :  { %v901_v39 = vsel %vm467_vm8, %v1684_v3, %v894_v14 }
 0x21a   :  { %v818_v0 = vsel %vm284_vm6, %v684_v15, 0  ;;  %v821_v7 = vsel %vm284_vm6, %v685_v40, 0  ;;  %v938_v6 = vsel %vm184_vm5, %v890_v9, %v930_v47  ;;  %v903_v3 = vmul.f32 %v901_v39, %v472_v45  ;;  %v1028_v39 = vld.sshfl [vmem:[#allocation1 + $0x8] sm:$0xff pattern:$0x75316420] }
 0x21b   :  { %856 = vmatpush.bf16.msra.mxu2 %v818_v0  ;;  %869 = vmatpush.bf16.msra.mxu3 %v821_v7 }
 0x21c   :  { %v908_v18 = vpop.permute.xlu1 %907  ;;  %v896_v5 = vpop.permute.xlu0 %895  ;;  %v927_v2 = vrot.slane %v903_v3, 4 }
 0x21d   :  { %v918_v43 = vsel %vm499_vm10, %v914_v41, %v908_v18  ;;  %v899_v32 = vsel %vm467_vm8, %v896_v5, %v898_v34  ;;  %v900_v1 = vsel %vm467_vm8, %v894_v14, %v896_v5 }
 0x21e   :  { %v922_v25 = vmul.f32 %v918_v43, %v507_v33  ;;  %1089 = vmatmul.msk.bf16.vlgmr.msra.gmra.mxu2 %vm280_vm7, %v1726_v52  ;;  %v905_v53 = vmul.f32 %v899_v32, %v474_v17  ;;  %v904_v24 = vmul.f32 %v900_v1, %v473_v37  ;;  %v1029_v1 = vld.sshfl [vmem:[#allocation1 + $0x10] sm:$0xff pattern:$0x75316420] }
 0x21f   :  { %1090 = vmatmul.msk.bf16.vlgmr.msra.gmra.mxu3 %vm280_vm7, %v1726_v52  ;;  %1087 = vmatmul.msk.bf16.vlgmr.msra.gmra.mxu0 %vm280_vm7, %v1726_v52 }
 0x220   :  { %v942_v30 = vpack.c.bf16 %v922_v25, %v938_v6  ;;  %v929_v17 = vrot.slane %v905_v53, 4 }
 0x222   :  { %v958_v33 = vsel %vm284_vm6, %v942_v30, 0  ;;  %v1030_v30 = vld.sshfl [vmem:[#allocation1 + $0x18] sm:$0xff pattern:$0x75316420] }
 0x223   :  { %1006 = vmatpush.bf16.msrb.mxu3 %v958_v33 }
 0x224   :  { %v912_v13 = vpop.permute.xlu1 %911  ;;  %v880_v11 = vpop.permute.xlu0 %879 }
 0x225   :  { %v915_v52 = vsel %vm499_vm10, %v912_v13, %v914_v41  ;;  %v883_v58 = vsel %vm435_vm9, %v880_v11, %v1775_v10  ;;  %v928_v10 = vrot.slane %v904_v24, 4 }
 0x226   :  { %v921_v60 = vmul.f32 %v915_v52, %v506_v46  ;;  %v889_v56 = vmul.f32 %v883_v58, %v442_v28  ;;  %v944_v46 = vld [vmem:[#allocation5 + $0x4] sm:$0x3] }
 0x228   :  { %v937_v50 = vsel %vm184_vm5, %v889_v56, %v929_v17 }
 0x229   :  { %v941_v44 = vpack.c.bf16 %v921_v60, %v937_v50  ;;  %v1027_v60 = vld.sshfl [vmem:[#allocation1] sm:$0xff pattern:$0x75316420] }
 0x22b   :  { %v955_v55 = vsel %vm284_vm6, %v941_v44, 0 }
 0x22c   :  { %v910_v4 = vpop.permute.xlu1 %909  ;;  %v878_v21 = vpop.permute.xlu0 %877  ;;  %993 = vmatpush.bf16.msrb.mxu2 %v955_v55 }
 0x22d   :  { %v916_v51 = vsel %vm499_vm10, %v910_v4, %v912_v13  ;;  %v917_v28 = vsel %vm499_vm10, %v908_v18, %v910_v4  ;;  %v884_v45 = vsel %vm435_vm9, %v878_v21, %v880_v11  ;;  %v885_v37 = vsel %vm435_vm9, %v1724_v62, %v878_v21 }
 0x22e   :  { %v919_v54 = vmul.f32 %v917_v28, %v504_v26  ;;  %v920_v29 = vmul.f32 %v916_v51, %v505_v27  ;;  %v887_v48 = vmul.f32 %v885_v37, %v440_v20  ;;  %v888_v22 = vmul.f32 %v884_v45, %v1902_v12 }
 0x22f   :  { %1093 = vmatmul.msk.bf16.vlgmr.msrb.gmra.mxu2 %vm280_vm7, %v944_v46  ;;  %1094 = vmatmul.msk.bf16.vlgmr.msrb.gmra.mxu3 %vm280_vm7, %v944_v46 }
 0x230   :  { %v935_v34 = vsel %vm184_vm5, %v887_v48, %v927_v2  ;;  %v936_v49 = vsel %vm184_vm5, %v888_v22, %v928_v10 }
 0x231   :  { %v939_v62 = vpack.c.bf16 %v919_v54, %v935_v34  ;;  %v940_v42 = vpack.c.bf16 %v920_v29, %v936_v49 }
 0x233   :  { %v949_v26 = vsel %vm284_vm6, %v939_v62, 0  ;;  %v952_v27 = vsel %vm284_vm6, %v940_v42, 0 }
 0x234   :  { %967 = vmatpush.bf16.msrb.mxu0 %v949_v26  ;;  %980 = vmatpush.bf16.msrb.mxu1 %v952_v27 }
 0x237   :  { %1091 = vmatmul.msk.bf16.vlgmr.msrb.gmra.mxu0 %vm280_vm7, %v944_v46  ;;  %1092 = vmatmul.msk.bf16.vlgmr.msrb.gmra.mxu1 %vm280_vm7, %v944_v46 }
 0x265   :  { %v1018_v47 = vpop.permute.xlu2 %1017 }
 0x26b   :  { %v778_v35 = vpop.f32.mrf.mxu1 }
 0x273   :  { %v780_v36 = vpop.f32.mrf.mxu1 }
 0x27c   :  { %v845_v20 = vpop.f32.mrf.mxu1 }
 0x27d   :  { %v846_v9 = vadd.f32 %v845_v20, %v778_v35 }
 0x284   :  { %v847_v57 = vpop.f32.mrf.mxu1 }
 0x28c   :  { %v765_v23 = vpop.f32.mrf.mxu0 }
 0x291   :  { %v791_v59 = vpop.f32.mrf.mxu2 }
 0x292   :  { %v804_v38 = vpop.f32.mrf.mxu3 }
 0x294   :  { %v767_v61 = vpop.f32.mrf.mxu0 }
 0x299   :  { %v793_v31 = vpop.f32.mrf.mxu2 }
 0x29a   :  { %v806_v16 = vpop.f32.mrf.mxu3 }
 0x29c   :  { %v832_v8 = vpop.f32.mrf.mxu0 }
 0x29d   :  { %v833_v43 = vadd.f32 %v832_v8, %v765_v23 }
 0x2a1   :  { %v858_v41 = vpop.f32.mrf.mxu2 }
 0x2a2   :  { %v871_v15 = vpop.f32.mrf.mxu3  ;;  %v859_v0 = vadd.f32 %v858_v41, %v791_v59 }
 0x2a3   :  { %v872_v7 = vadd.f32 %v871_v15, %v804_v38 }
 0x2a4   :  { %v834_v40 = vpop.f32.mrf.mxu0 }
 0x2a9   :  { %v860_v19 = vpop.f32.mrf.mxu2 }
 0x2aa   :  { %v873_v63 = vpop.f32.mrf.mxu3 }
 0x2b2   :  { %v995_v18 = vpop.f32.mrf.mxu2  ;;  %v1008_v5 = vpop.f32.mrf.mxu3 }
 0x2b3   :  { %v1014_v25 = vadd.f32 %v995_v18, %v859_v0  ;;  %v1015_v6 = vadd.f32 %v1008_v5, %v872_v7 }
 0x2b4   :  { %v982_v32 = vpop.f32.mrf.mxu1  ;;  %v969_v14 = vpop.f32.mrf.mxu0 }
 0x2b5   :  { %v1013_v53 = vadd.f32 %v982_v32, %v846_v9  ;;  %v1022_v33 = vadd.f32 %v1018_v47, %v1014_v25  ;;  %v1023_v13 = vadd.f32 %v1018_v47, %v1015_v6  ;;  %v1012_v11 = vadd.f32 %v969_v14, %v833_v43 }
 0x2b7   :  { %v1021_v52 = vadd.f32 %v1018_v47, %v1013_v53  ;;  %v1038_v58 = vadd.f32 %v1030_v30, %v1023_v13  ;;  %v1020_v17 = vadd.f32 %v1018_v47, %v1012_v11  ;;  %v1037_v3 = vadd.f32 %v1029_v1, %v1022_v33 }
 0x2b9   :  { %v1036_v56 = vadd.f32 %v1028_v39, %v1021_v52  ;;  %v1044_v24 = vrot.slane %v1038_v58, 4  ;;  %v1035_v2 = vadd.f32 %v1027_v60, %v1020_v17 }
 0x2ba   :  { %v1010_v50 = vpop.f32.mrf.mxu3  ;;  %v997_v44 = vpop.f32.mrf.mxu2 }
 0x2bb   :  { %v1043_v55 = vrot.slane %v1036_v56, 4  ;;  %v1046_v10 = vsel %vm184_vm5, %v1037_v3, %v1044_v24 }
 0x2bc   :  { %v984_v4 = vpop.f32.mrf.mxu1  ;;  %v971_v21 = vpop.f32.mrf.mxu0  ;;  %1050 = vst [vmem:[#allocation8 + $0x8] sm:$0xff] %v1046_v10 }
 0x2bd   :  { %v1045_v46 = vsel %vm184_vm5, %v1035_v2, %v1043_v55 }
 0x2be   :  { %1049 = vst [vmem:[#allocation8] sm:$0xff] %v1045_v46 }
 0x2bf   :  { %1061 = dma.vmem_to_hbm [thread:$0]  %s1057_s22, 256, %s1059_s25, [#allocation4]  }
 0x2c0   :  { %1214 = dma.done.wait [#allocation4], 256  }
 0x2c1   :  { %1215 = vsyncadd [#allocation4], 4294967040 }
 0x2c2   :  { %1066 = vsyncpa [#allocation3], 1 }
 0x2c3   :  { %1067 = vsyncpa [#allocation6], 1 }
 0x2c4   :  { %1068 = vsyncpa [#allocation4], 1 }

</bundles_post_ra>
